<compile_context>
chip_gen: v5e
topology: v5e:2x2
jax: 0.10.0
libtpu: 0.0.40
codegen_flags: <defaults>
</compile_context>

<pallas_src>
import functools

import jax
import jax.numpy as jnp
import numpy as np
from jax.experimental import pallas as pl
from jax.experimental.pallas import tpu as pltpu

_EPS = 1e-5


def _basic_block_kernel(x_ref, m1_ref, g1_ref, b1_ref, m2_ref, g2_ref, b2_ref,
                        o_ref, *, N, H, W, C):
    """Whole-array VMEM residents (toy sizes).

    x_ref    : (N*H, W*C)        input activation, lane-dense, f32
    m*_ref   : (3*W*C, W*C)      banded conv matrices, dy taps stacked on K, bf16
    g*/b*    : (1, W*C)          gamma / beta tiled across width, f32
    o_ref    : (N*H, W*C)        output, lane-dense
    """
    R = N * H                     # rows of the lane-dense layout
    L = W * C                     # lane width (multiple of 128)
    inv_count = 1.0 / float(N * H * W)

    # Per-row image-boundary masks: after a roll along rows, the tap that
    # would read across an image boundary is zeroed (replaces explicit
    # zero-padded halo rows; no scratch, no misaligned stores).
    row = jax.lax.broadcasted_iota(jnp.int32, (R, 1), 0)
    loc = jax.lax.rem(row, H)
    m_up = (loc > 0).astype(jnp.float32)        # first row of each image: no "up" tap
    m_dn = (loc < H - 1).astype(jnp.float32)    # last row of each image: no "down" tap

    x_f32 = x_ref[...].astype(jnp.float32)

    def conv3x3(act, m_ref):
        # One MXU dot, K = 3*L.  The dy shift is an aligned XLU roll; the dx
        # taps, horizontal zero padding and channel contraction are folded
        # into the banded matrix built wrapper-side.
        up = pltpu.roll(act, 1, axis=0) * m_up          # act[r-1], boundary-masked
        dn = pltpu.roll(act, R - 1, axis=0) * m_dn      # act[r+1], boundary-masked
        lhs = jnp.concatenate([up, act, dn], axis=1).astype(jnp.bfloat16)  # (R, 3L)
        return jnp.dot(lhs, m_ref[...], preferred_element_type=jnp.float32)

    def bn(y, g_row, b_row):
        # Training-mode BatchNorm2d: single-pass batch stats in f32, biased
        # variance, folded into a per-lane scale/shift.
        s1 = jnp.sum(y, axis=0, keepdims=True)          # (1, L)
        s2 = jnp.sum(y * y, axis=0, keepdims=True)      # (1, L)
        stats = jnp.concatenate([s1, s2], axis=0)       # (2, L)
        # Per-channel segment-sum + broadcast back across the W lane positions
        # via log2(W) strided roll-adds (each channel's lanes form a cyclic
        # group under shifts by C because L = W*C).  Runs on the idle XLU.
        step = C
        while step < L:
            stats = stats + pltpu.roll(stats, step, axis=1)
            step *= 2
        mean = stats[0:1, :] * inv_count
        ex2 = stats[1:2, :] * inv_count
        inv = jax.lax.rsqrt(ex2 - mean * mean + _EPS)
        scale = inv * g_row                              # (1, L)
        shift = b_row - mean * scale
        return y * scale + shift

    # conv1 -> bn1 -> relu
    a1 = jnp.maximum(bn(conv3x3(x_f32, m1_ref), g1_ref[...], b1_ref[...]), 0.0)
    # conv2 -> bn2
    a2 = bn(conv3x3(a1, m2_ref), g2_ref[...], b2_ref[...])
    # residual add + relu, full-lane aligned store
    o_ref[...] = jnp.maximum(a2 + x_f32, 0.0).astype(o_ref.dtype)


def _conv_matrix_kdy(w_oihw, width):
    """PyTorch OIHW (Cout, Cin, 3, 3) -> (3*W*Cin, W*Cout) bf16.

    The three dy taps are stacked along K (matching the rolled-LHS concat):
    m[dy*W*Cin + w_in*Cin + ci, w_out*Cout + co] = w[co, ci, dy, w_in-w_out+1]
    when |w_in - w_out| <= 1, else 0 (horizontal zero padding is implicit).
    """
    w_hwio = jnp.transpose(w_oihw, (2, 3, 1, 0)).astype(jnp.float32)  # (3,3,ci,co)
    _, _, cin, cout = w_hwio.shape
    wi = jnp.arange(width)[:, None]
    wo = jnp.arange(width)[None, :]
    dx = wi - wo + 1                                                  # (W, W)
    valid = ((dx >= 0) & (dx <= 2)).astype(jnp.float32)
    dx = jnp.clip(dx, 0, 2)
    blocks = w_hwio[:, dx] * valid[None, :, :, None, None]            # (3,W,W,ci,co)
    m = jnp.transpose(blocks, (0, 1, 3, 2, 4)).reshape(3, width * cin, width * cout)
    return m.reshape(3 * width * cin, width * cout).astype(jnp.bfloat16)


def basic_block_forward(x_nchw, w1, g1, b1, w2, g2, b2):
    """x_nchw: (N, C, H, W); w1, w2: (C, C, 3, 3) OIHW. stride=1, no downsample."""
    N, C, H, W = x_nchw.shape
    L = W * C
    if L % 128 != 0 or (W & (W - 1)) != 0:
        # TODO(synk): general shapes need a dense K=9*C im2col + row-tiled grid.
        raise NotImplementedError("demo kernel assumes W*C % 128 == 0 and W a power of 2")

    # NCHW -> NHWC -> lane-dense (N*H, W*C); no padding, x is read exactly once.
    x2d = jnp.transpose(x_nchw, (0, 2, 3, 1)).reshape(N * H, L)

    m1 = _conv_matrix_kdy(w1, W)
    m2 = _conv_matrix_kdy(w2, W)

    def tile_param(p):
        return jnp.tile(p.astype(jnp.float32), W)[None, :]            # (1, W*C)

    kernel = functools.partial(_basic_block_kernel, N=N, H=H, W=W, C=C)
    out2d = pl.pallas_call(
        kernel,
        out_shape=jax.ShapeDtypeStruct((N * H, L), x_nchw.dtype),
        in_specs=[pl.BlockSpec(memory_space=pltpu.MemorySpace.VMEM)] * 7,
        out_specs=pl.BlockSpec(memory_space=pltpu.MemorySpace.VMEM),
    )(x2d, m1, tile_param(g1), tile_param(b1), m2, tile_param(g2), tile_param(b2))

    return jnp.transpose(out2d.reshape(N, H, W, C), (0, 3, 1, 2))     # back to NCHW


def _reference(x, w1, g1, b1, w2, g2, b2):
    """Plain-JAX f32 reference of the PyTorch forward (training-mode BN)."""
    def conv(y, w):
        return jax.lax.conv_general_dilated(
            y, w, window_strides=(1, 1), padding=((1, 1), (1, 1)),
            dimension_numbers=("NCHW", "OIHW", "NCHW"))

    def bn(y, g, b):
        mean = jnp.mean(y, axis=(0, 2, 3), keepdims=True)
        var = jnp.mean((y - mean) ** 2, axis=(0, 2, 3), keepdims=True)
        return ((y - mean) * jax.lax.rsqrt(var + _EPS)
                * g.reshape(1, -1, 1, 1) + b.reshape(1, -1, 1, 1))

    out = jnp.maximum(bn(conv(x, w1), g1, b1), 0.0)
    out = bn(conv(out, w2), g2, b2) + x
    return jnp.maximum(out, 0.0)


# TODO(synk): PyTorch training-mode BatchNorm2d also updates running_mean /
#             running_var buffers; this kernel produces only the forward
#             activations (no running-stat side outputs).

if __name__ == "__main__":
    # inplanes == planes, stride=1, downsample=None; W*C = 128 (lane-dense).
    N, C, H, W = 2, 8, 16, 16
    key = jax.random.PRNGKey(0)
    ks = jax.random.split(key, 7)
    x = jax.random.normal(ks[0], (N, C, H, W), jnp.float32)
    w1 = 0.1 * jax.random.normal(ks[1], (C, C, 3, 3), jnp.float32)
    w2 = 0.1 * jax.random.normal(ks[2], (C, C, 3, 3), jnp.float32)
    g1 = 1.0 + 0.1 * jax.random.normal(ks[3], (C,), jnp.float32)
    b1 = 0.1 * jax.random.normal(ks[4], (C,), jnp.float32)
    g2 = 1.0 + 0.1 * jax.random.normal(ks[5], (C,), jnp.float32)
    b2 = 0.1 * jax.random.normal(ks[6], (C,), jnp.float32)

    out = basic_block_forward(x, w1, g1, b1, w2, g2, b2)
    out = jax.block_until_ready(out)

    ref = _reference(x, w1, g1, b1, w2, g2, b2)
    # Tolerance loosened vs the pure-f32 reference because the conv matmuls
    # now run with bf16 operands on the MXU (f32 accumulation / BN stats).
    np.testing.assert_allclose(np.asarray(out), np.asarray(ref),
                               atol=6e-2, rtol=6e-2)
    print("KERNEL_OK")
</pallas_src>

<mosaic_0001>
module attributes {stable_mosaic.version = 11 : i64} {
  func.func @_basic_block_kernel(%arg0: memref<32x128xf32, #tpu.memory_space<vmem>>, %arg1: memref<384x128xbf16, #tpu.memory_space<vmem>>, %arg2: memref<1x128xf32, #tpu.memory_space<vmem>>, %arg3: memref<1x128xf32, #tpu.memory_space<vmem>>, %arg4: memref<384x128xbf16, #tpu.memory_space<vmem>>, %arg5: memref<1x128xf32, #tpu.memory_space<vmem>>, %arg6: memref<1x128xf32, #tpu.memory_space<vmem>>, %arg7: memref<32x128xf32, #tpu.memory_space<vmem>>) attributes {dimension_semantics = [], scalar_prefetch = 0 : i64, scratch_operands = 0 : i64, tpu.core_type = #tpu.core_type<tc>} {
    %0 = tpu.iota {dimensions = array<i32: 0>} : vector<32x1xi32>
    %c16_i32 = arith.constant 16 : i32
    %1 = vector.broadcast %c16_i32 : i32 to vector<32x1xi32>
    %2 = arith.remsi %0, %1 : vector<32x1xi32>
    %c0_i32 = arith.constant 0 : i32
    %3 = vector.broadcast %c0_i32 : i32 to vector<32x1xi32>
    %4 = arith.cmpi sgt, %2, %3 : vector<32x1xi32>
    %5 = arith.extui %4 : vector<32x1xi1> to vector<32x1xi32>
    %6 = arith.sitofp %5 : vector<32x1xi32> to vector<32x1xf32>
    %c15_i32 = arith.constant 15 : i32
    %7 = vector.broadcast %c15_i32 : i32 to vector<32x1xi32>
    %8 = arith.cmpi slt, %2, %7 : vector<32x1xi32>
    %9 = arith.extui %8 : vector<32x1xi1> to vector<32x1xi32>
    %10 = arith.sitofp %9 : vector<32x1xi32> to vector<32x1xf32>
    %c0 = arith.constant 0 : index
    %c0_0 = arith.constant 0 : index
    %11 = vector.load %arg0[%c0, %c0_0] : memref<32x128xf32, #tpu.memory_space<vmem>>, vector<32x128xf32>
    %c1_i32 = arith.constant 1 : i32
    %12 = tpu.dynamic_rotate %11 by %c1_i32 dim 0 : vector<32x128xf32>, i32 -> vector<32x128xf32>
    %13 = vector.broadcast %6 : vector<32x1xf32> to vector<32x128xf32>
    %14 = arith.mulf %12, %13 : vector<32x128xf32>
    %c31_i32 = arith.constant 31 : i32
    %15 = tpu.dynamic_rotate %11 by %c31_i32 dim 0 : vector<32x128xf32>, i32 -> vector<32x128xf32>
    %16 = vector.broadcast %10 : vector<32x1xf32> to vector<32x128xf32>
    %17 = arith.mulf %15, %16 : vector<32x128xf32>
    %18 = tpu.concatenate %14, %11, %17 in 1 : vector<32x128xf32>, vector<32x128xf32>, vector<32x128xf32> -> vector<32x384xf32>
    %19 = arith.truncf %18 : vector<32x384xf32> to vector<32x384xbf16>
    %c0_1 = arith.constant 0 : index
    %c0_2 = arith.constant 0 : index
    %20 = vector.load %arg1[%c0_1, %c0_2] : memref<384x128xbf16, #tpu.memory_space<vmem>>, vector<384x128xbf16>
    %cst = arith.constant dense<0.000000e+00> : vector<32x128xf32>
    %21 = tpu.matmul %19, %20, %cst {dimension_numbers = #tpu.dot_dimension_numbers<[1], [0], [0], [1], [0, 0, 1, 1], [], []>} : vector<32x384xbf16>, vector<384x128xbf16>, vector<32x128xf32> -> vector<32x128xf32>
    %c0_3 = arith.constant 0 : index
    %c0_4 = arith.constant 0 : index
    %22 = vector.load %arg2[%c0_3, %c0_4] : memref<1x128xf32, #tpu.memory_space<vmem>>, vector<1x128xf32>
    %c0_5 = arith.constant 0 : index
    %c0_6 = arith.constant 0 : index
    %23 = vector.load %arg3[%c0_5, %c0_6] : memref<1x128xf32, #tpu.memory_space<vmem>>, vector<1x128xf32>
    %cst_7 = arith.constant dense<0.000000e+00> : vector<128xf32>
    %24 = vector.multi_reduction <add>, %21, %cst_7 [0] : vector<32x128xf32> to vector<128xf32>
    %25 = vector.shape_cast %24 : vector<128xf32> to vector<1x128xf32>
    %26 = arith.mulf %21, %21 : vector<32x128xf32>
    %cst_8 = arith.constant dense<0.000000e+00> : vector<128xf32>
    %27 = vector.multi_reduction <add>, %26, %cst_8 [0] : vector<32x128xf32> to vector<128xf32>
    %28 = vector.shape_cast %27 : vector<128xf32> to vector<1x128xf32>
    %29 = tpu.concatenate %25, %28 in 0 : vector<1x128xf32>, vector<1x128xf32> -> vector<2x128xf32>
    %c8_i32 = arith.constant 8 : i32
    %30 = tpu.dynamic_rotate %29 by %c8_i32 dim 1 : vector<2x128xf32>, i32 -> vector<2x128xf32>
    %31 = arith.addf %29, %30 : vector<2x128xf32>
    %c16_i32_9 = arith.constant 16 : i32
    %32 = tpu.dynamic_rotate %31 by %c16_i32_9 dim 1 : vector<2x128xf32>, i32 -> vector<2x128xf32>
    %33 = arith.addf %31, %32 : vector<2x128xf32>
    %c32_i32 = arith.constant 32 : i32
    %34 = tpu.dynamic_rotate %33 by %c32_i32 dim 1 : vector<2x128xf32>, i32 -> vector<2x128xf32>
    %35 = arith.addf %33, %34 : vector<2x128xf32>
    %c64_i32 = arith.constant 64 : i32
    %36 = tpu.dynamic_rotate %35 by %c64_i32 dim 1 : vector<2x128xf32>, i32 -> vector<2x128xf32>
    %37 = arith.addf %35, %36 : vector<2x128xf32>
    %38 = vector.extract_strided_slice %37 {offsets = [0, 0], sizes = [1, 128], strides = [1, 1]} : vector<2x128xf32> to vector<1x128xf32>
    %cst_10 = arith.constant 0.001953125 : f32
    %39 = vector.broadcast %cst_10 : f32 to vector<1x128xf32>
    %40 = arith.mulf %38, %39 : vector<1x128xf32>
    %41 = vector.extract_strided_slice %37 {offsets = [1, 0], sizes = [1, 128], strides = [1, 1]} : vector<2x128xf32> to vector<1x128xf32>
    %cst_11 = arith.constant 0.001953125 : f32
    %42 = vector.broadcast %cst_11 : f32 to vector<1x128xf32>
    %43 = arith.mulf %41, %42 : vector<1x128xf32>
    %44 = arith.mulf %40, %40 : vector<1x128xf32>
    %45 = arith.subf %43, %44 : vector<1x128xf32>
    %cst_12 = arith.constant 9.99999974E-6 : f32
    %46 = vector.broadcast %cst_12 : f32 to vector<1x128xf32>
    %47 = arith.addf %45, %46 : vector<1x128xf32>
    %48 = math.rsqrt %47 : vector<1x128xf32>
    %49 = arith.mulf %48, %22 : vector<1x128xf32>
    %50 = arith.mulf %40, %49 : vector<1x128xf32>
    %51 = arith.subf %23, %50 : vector<1x128xf32>
    %52 = vector.broadcast %49 : vector<1x128xf32> to vector<32x128xf32>
    %53 = arith.mulf %21, %52 : vector<32x128xf32>
    %54 = vector.broadcast %51 : vector<1x128xf32> to vector<32x128xf32>
    %55 = arith.addf %53, %54 : vector<32x128xf32>
    %cst_13 = arith.constant 0.000000e+00 : f32
    %56 = vector.broadcast %cst_13 : f32 to vector<32x128xf32>
    %57 = arith.maximumf %55, %56 : vector<32x128xf32>
    %c1_i32_14 = arith.constant 1 : i32
    %58 = tpu.dynamic_rotate %57 by %c1_i32_14 dim 0 : vector<32x128xf32>, i32 -> vector<32x128xf32>
    %59 = vector.broadcast %6 : vector<32x1xf32> to vector<32x128xf32>
    %60 = arith.mulf %58, %59 : vector<32x128xf32>
    %c31_i32_15 = arith.constant 31 : i32
    %61 = tpu.dynamic_rotate %57 by %c31_i32_15 dim 0 : vector<32x128xf32>, i32 -> vector<32x128xf32>
    %62 = vector.broadcast %10 : vector<32x1xf32> to vector<32x128xf32>
    %63 = arith.mulf %61, %62 : vector<32x128xf32>
    %64 = tpu.concatenate %60, %57, %63 in 1 : vector<32x128xf32>, vector<32x128xf32>, vector<32x128xf32> -> vector<32x384xf32>
    %65 = arith.truncf %64 : vector<32x384xf32> to vector<32x384xbf16>
    %c0_16 = arith.constant 0 : index
    %c0_17 = arith.constant 0 : index
    %66 = vector.load %arg4[%c0_16, %c0_17] : memref<384x128xbf16, #tpu.memory_space<vmem>>, vector<384x128xbf16>
    %cst_18 = arith.constant dense<0.000000e+00> : vector<32x128xf32>
    %67 = tpu.matmul %65, %66, %cst_18 {dimension_numbers = #tpu.dot_dimension_numbers<[1], [0], [0], [1], [0, 0, 1, 1], [], []>} : vector<32x384xbf16>, vector<384x128xbf16>, vector<32x128xf32> -> vector<32x128xf32>
    %c0_19 = arith.constant 0 : index
    %c0_20 = arith.constant 0 : index
    %68 = vector.load %arg5[%c0_19, %c0_20] : memref<1x128xf32, #tpu.memory_space<vmem>>, vector<1x128xf32>
    %c0_21 = arith.constant 0 : index
    %c0_22 = arith.constant 0 : index
    %69 = vector.load %arg6[%c0_21, %c0_22] : memref<1x128xf32, #tpu.memory_space<vmem>>, vector<1x128xf32>
    %cst_23 = arith.constant dense<0.000000e+00> : vector<128xf32>
    %70 = vector.multi_reduction <add>, %67, %cst_23 [0] : vector<32x128xf32> to vector<128xf32>
    %71 = vector.shape_cast %70 : vector<128xf32> to vector<1x128xf32>
    %72 = arith.mulf %67, %67 : vector<32x128xf32>
    %cst_24 = arith.constant dense<0.000000e+00> : vector<128xf32>
    %73 = vector.multi_reduction <add>, %72, %cst_24 [0] : vector<32x128xf32> to vector<128xf32>
    %74 = vector.shape_cast %73 : vector<128xf32> to vector<1x128xf32>
    %75 = tpu.concatenate %71, %74 in 0 : vector<1x128xf32>, vector<1x128xf32> -> vector<2x128xf32>
    %c8_i32_25 = arith.constant 8 : i32
    %76 = tpu.dynamic_rotate %75 by %c8_i32_25 dim 1 : vector<2x128xf32>, i32 -> vector<2x128xf32>
    %77 = arith.addf %75, %76 : vector<2x128xf32>
    %c16_i32_26 = arith.constant 16 : i32
    %78 = tpu.dynamic_rotate %77 by %c16_i32_26 dim 1 : vector<2x128xf32>, i32 -> vector<2x128xf32>
    %79 = arith.addf %77, %78 : vector<2x128xf32>
    %c32_i32_27 = arith.constant 32 : i32
    %80 = tpu.dynamic_rotate %79 by %c32_i32_27 dim 1 : vector<2x128xf32>, i32 -> vector<2x128xf32>
    %81 = arith.addf %79, %80 : vector<2x128xf32>
    %c64_i32_28 = arith.constant 64 : i32
    %82 = tpu.dynamic_rotate %81 by %c64_i32_28 dim 1 : vector<2x128xf32>, i32 -> vector<2x128xf32>
    %83 = arith.addf %81, %82 : vector<2x128xf32>
    %84 = vector.extract_strided_slice %83 {offsets = [0, 0], sizes = [1, 128], strides = [1, 1]} : vector<2x128xf32> to vector<1x128xf32>
    %cst_29 = arith.constant 0.001953125 : f32
    %85 = vector.broadcast %cst_29 : f32 to vector<1x128xf32>
    %86 = arith.mulf %84, %85 : vector<1x128xf32>
    %87 = vector.extract_strided_slice %83 {offsets = [1, 0], sizes = [1, 128], strides = [1, 1]} : vector<2x128xf32> to vector<1x128xf32>
    %cst_30 = arith.constant 0.001953125 : f32
    %88 = vector.broadcast %cst_30 : f32 to vector<1x128xf32>
    %89 = arith.mulf %87, %88 : vector<1x128xf32>
    %90 = arith.mulf %86, %86 : vector<1x128xf32>
    %91 = arith.subf %89, %90 : vector<1x128xf32>
    %cst_31 = arith.constant 9.99999974E-6 : f32
    %92 = vector.broadcast %cst_31 : f32 to vector<1x128xf32>
    %93 = arith.addf %91, %92 : vector<1x128xf32>
    %94 = math.rsqrt %93 : vector<1x128xf32>
    %95 = arith.mulf %94, %68 : vector<1x128xf32>
    %96 = arith.mulf %86, %95 : vector<1x128xf32>
    %97 = arith.subf %69, %96 : vector<1x128xf32>
    %98 = vector.broadcast %95 : vector<1x128xf32> to vector<32x128xf32>
    %99 = arith.mulf %67, %98 : vector<32x128xf32>
    %100 = vector.broadcast %97 : vector<1x128xf32> to vector<32x128xf32>
    %101 = arith.addf %99, %100 : vector<32x128xf32>
    %102 = arith.addf %101, %11 : vector<32x128xf32>
    %cst_32 = arith.constant 0.000000e+00 : f32
    %103 = vector.broadcast %cst_32 : f32 to vector<32x128xf32>
    %104 = arith.maximumf %102, %103 : vector<32x128xf32>
    %c0_33 = arith.constant 0 : index
    %c0_34 = arith.constant 0 : index
    %105 = vector.load %arg7[%c0_33, %c0_34] : memref<32x128xf32, #tpu.memory_space<vmem>>, vector<32x128xf32>
    tpu.vector_store %arg7[%c0_33, %c0_34], %104 {strides = array<i32>} : memref<32x128xf32, #tpu.memory_space<vmem>>, vector<32x128xf32>,
    return
  }
}

</mosaic_0001>

<bundles_post_ra>
// kernel: tpu_custom_call.1
= control target key start
LH: loop header
LB: loop body
LE: loop exit
PB: predicated region body
PF: predicated region fallthrough
CT: control target
= control target key end

     0   :  { %12 = vsyncpa [#allocation3], 0  ;;  %s1478_s0 = inlined_call_operand.hbm [shape: f32[32,128], index: 0, kind: input, shape index: {}]   ;;  %s1479_s1 = inlined_call_operand.hbm [shape: bf16[384,128], index: 1, kind: input, shape index: {}]   ;;  %s1480_s2 = inlined_call_operand.vmem [shape: f32[1,128], index: 2, kind: input, shape index: {}]   ;;  %s1481_s3 = inlined_call_operand.vmem [shape: f32[1,128], index: 3, kind: input, shape index: {}]   ;;  %s1482_s4 = inlined_call_operand.hbm [shape: bf16[384,128], index: 4, kind: input, shape index: {}]   ;;  %s1483_s5 = inlined_call_operand.vmem [shape: f32[1,128], index: 5, kind: input, shape index: {}]   ;;  %s1484_s6 = inlined_call_operand.vmem [shape: f32[1,128], index: 6, kind: input, shape index: {}]   ;;  %s1485_s7 = inlined_call_operand.hbm [shape: f32[32,128], index: 7, kind: output, shape index: {}]  }
   0x1   :  { %13 = vsyncpa [#allocation6], 0  ;;  %s32_s26 = sshll.u32 %s1479_s1, 4  ;;  %s33_s26 = int_to_ptr.hbm [resolvable:$true] %s32_s26 }
   0x2   :  { %14 = vsyncpa [#allocation4], 0  ;;  %s1261_s27 = smov [#allocation5]   ;;  %s19_s8 = sshll.u32 %s1478_s0, 4  ;;  %s20_s8 = int_to_ptr.hbm [resolvable:$true] %s19_s8 }
   0x3   :  { %s34_s28 = sshll.u32 %s1261_s27, 4  ;;  %s1262_s9 = smov 64   ;;  %s35_s28 = int_to_ptr.vmem [resolvable:$true] %s34_s28 }
   0x4   :  { %s1263_s10 = smov 4   ;;  %s1264_s11 = smov [#allocation2]  }
   0x5   :  { %40 = dma.hbm_to_vmem [thread:$0]  %s33_s26, 3072, %s35_s28, [#allocation6], %s1262_s9, %s1262_s9, %s1263_s10  }
   0x6   :  { %s21_s12 = sshll.u32 %s1264_s11, 4  ;;  %s1265_s13 = smov 128   ;;  %s22_s12 = int_to_ptr.vmem [resolvable:$true] %s21_s12 }
   0x7   :  { %s1266_s1 = smov 8   ;;  %s49_s16 = sshll.u32 %s1482_s4, 4  ;;  %s50_s16 = int_to_ptr.hbm [resolvable:$true] %s49_s16 }
   0x8   :  { %27 = dma.hbm_to_vmem [thread:$0]  %s20_s8, 512, %s22_s12, [#allocation3], %s1265_s13, %s1265_s13, %s1266_s1  }
   0x9   :  { %s1267_s0 = smov [#allocation7]  }
   0xa   :  { %s51_s17 = sshll.u32 %s1267_s0, 4  ;;  %s52_s17 = int_to_ptr.vmem [resolvable:$true] %s51_s17 }
   0xb   :  { %57 = dma.hbm_to_vmem [thread:$0]  %s50_s16, 3072, %s52_s17, [#allocation6], %s1262_s9, %s1262_s9, %s1263_s10  }
   0xc   :  { %1255 = dma.done.wait [#allocation3], 512  }
   0xd   :  { %1256 = vsyncadd [#allocation3], 4294966784 }
   0xe   :  { %1257 = dma.done.wait [#allocation6], 6144  }
   0xf   :  { %1258 = vsyncadd [#allocation6], 4294961152  ;;  %v1085_v0 = vld [vmem:[#allocation5 + $0x38] sm:$0xff]  ;;  %v1084_v3 = vld [vmem:[#allocation5 + $0x30] sm:$0xff]  ;;  %v74_v6 = vlaneseq  ;;  %v1268_v33 = vmov 0.0   ;;  %vm440_vm6 = vcmask 1040384  }
  0x10   :  { %v1093_v1 = vld [vmem:[#allocation5 + $0x78] sm:$0xff]  ;;  %359 = vmatpush.bf16.msra.mxu0 %v1085_v0  ;;  %v1092_v4 = vld [vmem:[#allocation5 + $0x70] sm:$0xff]  ;;  %v1083_v7 = vld [vmem:[#allocation5 + $0x28] sm:$0xff]  ;;  %s1269_s4 = smov 16   ;;  %s1270_s18 = smov 32  }
  0x11   :  { %v1101_v2 = vld [vmem:[#allocation5 + $0xb8] sm:$0xff]  ;;  %378 = vmatpush.bf16.msra.mxu1 %v1093_v1  ;;  %v1100_v5 = vld [vmem:[#allocation5 + $0xb0] sm:$0xff]  ;;  %v1091_v8 = vld [vmem:[#allocation5 + $0x68] sm:$0xff]  ;;  %v1328_v10 = vshrl.u32 %v74_v6, 7  ;;  %s868_s27 = sshll.u32 %s1485_s7, 4  ;;  %s869_s27 = int_to_ptr.hbm [resolvable:$true] %s868_s27 }
  0x12   :  { %397 = vmatpush.bf16.msra.mxu2 %v1101_v2  ;;  %v1099_v9 = vld [vmem:[#allocation5 + $0xa8] sm:$0xff]  ;;  %v1082_v11 = vld [vmem:[#allocation5 + $0x20] sm:$0xff]  ;;  %v1081_v15 = vld [vmem:[#allocation5 + $0x18] sm:$0xff] }
  0x13   :  { %v1090_v12 = vld [vmem:[#allocation5 + $0x60] sm:$0xff]  ;;  %v76_v14 = vadd.s32 8, %v1328_v10  ;;  %v1089_v16 = vld [vmem:[#allocation5 + $0x58] sm:$0xff]  ;;  %v83_v18 = vand.u32 15, %v1328_v10  ;;  %v1336_v21 = vld [vmem:[#allocation2 + $0x8] sm:$0xff]  ;;  %vm139_vm1 = vcmp.lt.s32.totalorder %v1328_v10, 1 }
  0x14   :  { %360 = vmatpush.bf16.msra.mxu0 %v1084_v3  ;;  %v1098_v13 = vld [vmem:[#allocation5 + $0xa0] sm:$0xff]  ;;  %v1097_v17 = vld [vmem:[#allocation5 + $0x98] sm:$0xff]  ;;  %v1338_v23 = vld [vmem:[#allocation2 + $0x10] sm:$0xff]  ;;  %v149_v29 = vrot.slane %v1336_v21, 1  ;;  %vm152_vm3 = vcmp.lt.s32.totalorder %v1328_v10, 7  ;;  %v136_v35 = vrot.slane %v1336_v21, 7 }
  0x15   :  { %379 = vmatpush.bf16.msra.mxu1 %v1092_v4  ;;  %v1332_v19 = vld [vmem:[#allocation2] sm:$0xff]  ;;  %v1334_v20 = vld [vmem:[#allocation2 + $0x18] sm:$0xff]  ;;  %v90_v22 = vand.u32 15, %v76_v14  ;;  %v1080_v24 = vld [vmem:[#allocation5 + $0x10] sm:$0xff]  ;;  %vm107_vm0 = vcmp.gt.s32.totalorder %v83_v18, 0  ;;  %v150_v30 = vrot.slane %v1338_v23, 1 }
  0x16   :  { %398 = vmatpush.bf16.msra.mxu2 %v1100_v5  ;;  %v1088_v25 = vld [vmem:[#allocation5 + $0x50] sm:$0xff]  ;;  %v135_v26 = vrot.slane %v1332_v19, 7  ;;  %v138_v27 = vrot.slane %v1334_v20, 7  ;;  %v1079_v31 = vld [vmem:[#allocation5 + $0x8] sm:$0xff]  ;;  %v1346_v34 = vsel %vm107_vm0, 1.0, %v1268_v33  ;;  %v148_v39 = vrot.slane %v1332_v19, 1 }
  0x17   :  { %v1096_v28 = vld [vmem:[#allocation5 + $0x90] sm:$0xff]  ;;  %vm120_vm2 = vcmp.lt.s32.totalorder %v90_v22, 15  ;;  %v1087_v32 = vld [vmem:[#allocation5 + $0x48] sm:$0xff]  ;;  %v154_v40 = vsel %vm152_vm3, %v149_v29, %v150_v30  ;;  %v1078_v42 = vld [vmem:[#allocation5] sm:$0xff]  ;;  %v77_v48 = vadd.s32 16, %v1328_v10  ;;  %v78_v49 = vadd.s32 24, %v1328_v10 }
  0x18   :  { %361 = vmatpush.bf16.msra.mxu0 %v1083_v7  ;;  %v143_v36 = vsel %vm139_vm1, %v138_v27, %v135_v26  ;;  %v1095_v37 = vld [vmem:[#allocation5 + $0x88] sm:$0xff]  ;;  %v1351_v38 = vsel %vm120_vm2, 1.0, %v1268_v33  ;;  %v1086_v43 = vld [vmem:[#allocation5 + $0x40] sm:$0xff]  ;;  %v142_v44 = vsel %vm139_vm1, %v135_v26, %v136_v35  ;;  %v155_v47 = vsel %vm152_vm3, %v148_v39, %v149_v29 }
  0x19   :  { %380 = vmatpush.bf16.msra.mxu1 %v1091_v8  ;;  %v144_v41 = vmul.f32 %v1346_v34, %v143_v36  ;;  %v158_v45 = vmul.f32 %v1351_v38, %v154_v40  ;;  %v1094_v46 = vld [vmem:[#allocation5 + $0x80] sm:$0xff]  ;;  %v162_v51 = vpack.c.bf16 %v1336_v21, %v1332_v19  ;;  %v97_v53 = vand.u32 15, %v77_v48 }
  0x1a   :  { %399 = vmatpush.bf16.msra.mxu2 %v1099_v9  ;;  %v104_v54 = vand.u32 15, %v78_v49  ;;  %v137_v55 = vrot.slane %v1338_v23, 7  ;;  %v151_v56 = vrot.slane %v1334_v20, 1  ;;  %v165_v2 = vpack.c.bf16 %v1334_v20, %v1338_v23 }
  0x1b   :  { %v161_v50 = vpack.c.bf16 %v142_v44, %v144_v41  ;;  %v163_v52 = vpack.c.bf16 %v158_v45, %v155_v47  ;;  %vm109_vm4 = vcmp.gt.s32.totalorder %v97_v53, 0 }
  0x1c   :  { %362 = vmatpush.bf16.msra.mxu0 %v1082_v11  ;;  %vm122_vm5 = vcmp.lt.s32.totalorder %v104_v54, 15  ;;  %v1368_v57 = vsel %vm109_vm4, 1.0, %v1268_v33  ;;  %v141_v58 = vsel %vm139_vm1, %v136_v35, %v137_v55  ;;  %v156_v60 = vsel %vm152_vm3, %v151_v56, %v148_v39 }
  0x1d   :  { %381 = vmatpush.bf16.msra.mxu1 %v1090_v12  ;;  %v1372_v59 = vsel %vm122_vm5, 1.0, %v1268_v33  ;;  %v146_v61 = vmul.f32 %v1368_v57, %v141_v58  ;;  %v140_v62 = vsel %vm139_vm1, %v137_v55, %v138_v27  ;;  %v153_v0 = vsel %vm152_vm3, %v150_v30, %v151_v56 }
  0x1e   :  { %400 = vmatpush.bf16.msra.mxu2 %v1098_v13  ;;  %v160_v63 = vmul.f32 %v1372_v59, %v156_v60 }
  0x1f   :  { %v164_v1 = vpack.c.bf16 %v140_v62, %v146_v61  ;;  %v1117_v62 = vld [vmem:[#allocation7 + $0x78] sm:$0xff] }
  0x20   :  { %363 = vmatpush.bf16.msra.mxu0 %v1081_v15  ;;  %v166_v3 = vpack.c.bf16 %v160_v63, %v153_v0  ;;  %v1116_v63 = vld [vmem:[#allocation7 + $0x70] sm:$0xff]  ;;  %v1109_v0 = vld [vmem:[#allocation7 + $0x38] sm:$0xff] }
  0x21   :  { %382 = vmatpush.bf16.msra.mxu1 %v1089_v16  ;;  %718 = vmatpush.bf16.msra.mxu3 %v1109_v0 }
  0x22   :  { %401 = vmatpush.bf16.msra.mxu2 %v1097_v17 }
  0x24   :  { %364 = vmatpush.bf16.msra.mxu0 %v1080_v24 }
  0x25   :  { %383 = vmatpush.bf16.msra.mxu1 %v1088_v25 }
  0x26   :  { %402 = vmatpush.bf16.msra.mxu2 %v1096_v28 }
  0x28   :  { %365 = vmatpush.bf16.msra.mxu0 %v1079_v31 }
  0x29   :  { %384 = vmatpush.bf16.msra.mxu1 %v1087_v32 }
  0x2a   :  { %403 = vmatpush.bf16.msra.mxu2 %v1095_v37 }
  0x2c   :  { %366 = vmatpush.bf16.msra.mxu0 %v1078_v42 }
  0x2d   :  { %385 = vmatpush.bf16.msra.mxu1 %v1086_v43 }
  0x2e   :  { %404 = vmatpush.bf16.msra.mxu2 %v1094_v46 }
  0x2f   :  { %367 = vmatmul.bf16.vlgmr.msra.gmra.mxu0 %v161_v50 }
  0x30   :  { %386 = vmatmul.bf16.vlgmr.msra.gmra.mxu1 %v162_v51  ;;  %737 = vmatpush.bf16.msrb.mxu0 %v1117_v62 }
  0x31   :  { %405 = vmatmul.bf16.vlgmr.msra.gmra.mxu2 %v163_v52 }
  0x32   :  { %1126 = vmatpush.bf16.msrb.mxu2 %v1117_v62 }
  0x34   :  { %738 = vmatpush.bf16.msrb.mxu0 %v1116_v63 }
  0x36   :  { %1127 = vmatpush.bf16.msrb.mxu2 %v1116_v63 }
  0x3f   :  { %372 = vmatmul.bf16.gmra.mxu0 %v164_v1  ;;  %v1125_v1 = vld [vmem:[#allocation7 + $0xb8] sm:$0xff] }
  0x40   :  { %391 = vmatmul.bf16.gmra.mxu1 %v165_v2  ;;  %v1115_v2 = vld [vmem:[#allocation7 + $0x68] sm:$0xff] }
  0x41   :  { %410 = vmatmul.bf16.gmra.mxu2 %v166_v3  ;;  %756 = vmatpush.bf16.msrb.mxu1 %v1125_v1  ;;  %v1108_v3 = vld [vmem:[#allocation7 + $0x30] sm:$0xff] }
  0x42   :  { %739 = vmatpush.bf16.msrb.mxu0 %v1115_v2  ;;  %1128 = vmatpush.bf16.msrb.mxu2 %v1115_v2 }
  0x43   :  { %719 = vmatpush.bf16.msra.mxu3 %v1108_v3 }
  0xac   :  { %v368_v4 = vpop.f32.mrf.mxu0 }
  0xad   :  { %v387_v5 = vpop.f32.mrf.mxu1 }
  0xae   :  { %v388_v13 = vadd.f32 %v387_v5, %v368_v4  ;;  %v1124_v4 = vld [vmem:[#allocation7 + $0xb0] sm:$0xff]  ;;  %v1114_v5 = vld [vmem:[#allocation7 + $0x60] sm:$0xff] }
  0xaf   :  { %757 = vmatpush.bf16.msrb.mxu1 %v1124_v4  ;;  %740 = vmatpush.bf16.msrb.mxu0 %v1114_v5 }
  0xb0   :  { %1129 = vmatpush.bf16.msrb.mxu2 %v1114_v5 }
  0xb4   :  { %v406_v6 = vpop.f32.mrf.mxu2  ;;  %v370_v7 = vpop.f32.mrf.mxu0 }
  0xb5   :  { %v389_v8 = vpop.f32.mrf.mxu1  ;;  %v1386_v18 = vadd.f32 %v406_v6, %v388_v13  ;;  %v1107_v6 = vld [vmem:[#allocation7 + $0x28] sm:$0xff] }
  0xb6   :  { %v390_v14 = vadd.f32 %v389_v8, %v370_v7  ;;  %v1123_v7 = vld [vmem:[#allocation7 + $0xa8] sm:$0xff]  ;;  %720 = vmatpush.bf16.msra.mxu3 %v1107_v6  ;;  %v1113_v8 = vld [vmem:[#allocation7 + $0x58] sm:$0xff] }
  0xb7   :  { %v427_v27 = vmul.f32 %v1386_v18, %v1386_v18  ;;  %758 = vmatpush.bf16.msrb.mxu1 %v1123_v7  ;;  %741 = vmatpush.bf16.msrb.mxu0 %v1113_v8 }
  0xb8   :  { %1130 = vmatpush.bf16.msrb.mxu2 %v1113_v8 }
  0xbc   :  { %v408_v9 = vpop.f32.mrf.mxu2  ;;  %v373_v11 = vpop.f32.mrf.mxu0 }
  0xbd   :  { %v392_v12 = vpop.f32.mrf.mxu1  ;;  %v1384_v17 = vadd.f32 %v408_v9, %v390_v14  ;;  %v1106_v9 = vld [vmem:[#allocation7 + $0x20] sm:$0xff]  ;;  %v1112_v14 = vld [vmem:[#allocation7 + $0x50] sm:$0xff] }
  0xbe   :  { %v393_v15 = vadd.f32 %v392_v12, %v373_v11  ;;  %v1122_v11 = vld [vmem:[#allocation7 + $0xa0] sm:$0xff]  ;;  %721 = vmatpush.bf16.msra.mxu3 %v1106_v9  ;;  %742 = vmatpush.bf16.msrb.mxu0 %v1112_v14 }
  0xbf   :  { %v428_v26 = vmul.f32 %v1384_v17, %v1384_v17  ;;  %v418_v28 = vadd.f32 %v1384_v17, %v1386_v18  ;;  %759 = vmatpush.bf16.msrb.mxu1 %v1122_v11  ;;  %1131 = vmatpush.bf16.msrb.mxu2 %v1112_v14 }
  0xc1   :  { %v431_v32 = vadd.f32 %v428_v26, %v427_v27  ;;  %v1111_v26 = vld [vmem:[#allocation7 + $0x48] sm:$0xff] }
  0xc2   :  { %743 = vmatpush.bf16.msrb.mxu0 %v1111_v26 }
  0xc3   :  { %1132 = vmatpush.bf16.msrb.mxu2 %v1111_v26 }
  0xc4   :  { %v411_v16 = vpop.f32.mrf.mxu2  ;;  %v375_v24 = vpop.f32.mrf.mxu0 }
  0xc5   :  { %v1388_v22 = vadd.f32 %v411_v16, %v393_v15  ;;  %v394_v25 = vpop.f32.mrf.mxu1  ;;  %v1105_v16 = vld [vmem:[#allocation7 + $0x18] sm:$0xff] }
  0xc6   :  { %v395_v30 = vadd.f32 %v394_v25, %v375_v24  ;;  %v1121_v24 = vld [vmem:[#allocation7 + $0x98] sm:$0xff]  ;;  %722 = vmatpush.bf16.msra.mxu3 %v1105_v16 }
  0xc7   :  { %v429_v29 = vmul.f32 %v1388_v22, %v1388_v22  ;;  %v419_v33 = vadd.f32 %v418_v28, %v1388_v22  ;;  %760 = vmatpush.bf16.msrb.mxu1 %v1121_v24  ;;  %v1104_v28 = vld [vmem:[#allocation7 + $0x10] sm:$0xff] }
  0xc9   :  { %v432_v36 = vadd.f32 %v431_v32, %v429_v29  ;;  %v1120_v29 = vld [vmem:[#allocation7 + $0x90] sm:$0xff]  ;;  %v1103_v32 = vld [vmem:[#allocation7 + $0x8] sm:$0xff] }
  0xca   :  { %723 = vmatpush.bf16.msra.mxu3 %v1104_v28 }
  0xcb   :  { %761 = vmatpush.bf16.msrb.mxu1 %v1120_v29 }
  0xcc   :  { %v413_v31 = vpop.f32.mrf.mxu2 }
  0xcd   :  { %v1399_v35 = vadd.f32 %v413_v31, %v395_v30  ;;  %v1110_v30 = vld [vmem:[#allocation7 + $0x40] sm:$0xff] }
  0xce   :  { %744 = vmatpush.bf16.msrb.mxu0 %v1110_v30  ;;  %1133 = vmatpush.bf16.msrb.mxu2 %v1110_v30 }
  0xcf   :  { %v420_v37 = vadd.f32 %v419_v33, %v1399_v35  ;;  %v430_v39 = vmul.f32 %v1399_v35, %v1399_v35  ;;  %v1119_v33 = vld [vmem:[#allocation7 + $0x88] sm:$0xff]  ;;  %724 = vmatpush.bf16.msra.mxu3 %v1103_v32 }
  0xd0   :  { %762 = vmatpush.bf16.msrb.mxu1 %v1119_v33 }
  0xd1   :  { %v421_v40 = vrot.slane %v420_v37, 4  ;;  %v433_v41 = vadd.f32 %v432_v36, %v430_v39  ;;  %v1118_v39 = vld [vmem:[#allocation7 + $0x80] sm:$0xff] }
  0xd3   :  { %v422_v42 = vadd.f32 %v421_v40, %v420_v37  ;;  %v434_v43 = vrot.slane %v433_v41, 4  ;;  %v1102_v37 = vld [vmem:[#allocation7] sm:$0xff] }
  0xd4   :  { %725 = vmatpush.bf16.msra.mxu3 %v1102_v37  ;;  %763 = vmatpush.bf16.msrb.mxu1 %v1118_v39 }
  0xd5   :  { %v423_v44 = vrot.slane %v422_v42, 2  ;;  %v435_v45 = vadd.f32 %v434_v43, %v433_v41 }
  0xd7   :  { %v424_v46 = vadd.f32 %v423_v44, %v422_v42  ;;  %v436_v47 = vrot.slane %v435_v45, 2 }
  0xd8   :  { %1134 = vmatpush.bf16.msrb.mxu3 %v1125_v1 }
  0xd9   :  { %v425_v48 = vrot.slane %v424_v46, 1  ;;  %v437_v49 = vadd.f32 %v436_v47, %v435_v45  ;;  %v1153_v45 = vld [vmem:[%s1480_s2] ss:$0 sm:$0xff] }
  0xdb   :  { %v438_v50 = vrot.slane %v437_v49, 1  ;;  %v426_v51 = vadd.f32 %v425_v48, %v424_v46 }
  0xdc   :  { %1135 = vmatpush.bf16.msrb.mxu3 %v1124_v4 }
  0xdd   :  { %v439_v52 = vadd.f32 %v438_v50, %v437_v49  ;;  %v417_v50 = vld [vmem:[%s1481_s3] sm:$0x1] }
  0xdf   :  { %v441_v53 = vsel %vm440_vm6, %v426_v51, %v439_v52 }
  0xe0   :  { %442 = vrot.lane.b32.xlu0 %v441_v53, %s1266_s1  ;;  %1136 = vmatpush.bf16.msrb.mxu3 %v1123_v7 }
  0xe4   :  { %1137 = vmatpush.bf16.msrb.mxu3 %v1122_v11 }
  0xe8   :  { %1138 = vmatpush.bf16.msrb.mxu3 %v1121_v24 }
  0xec   :  { %1139 = vmatpush.bf16.msrb.mxu3 %v1120_v29 }
  0xf0   :  { %1140 = vmatpush.bf16.msrb.mxu3 %v1119_v33 }
  0xf4   :  { %1141 = vmatpush.bf16.msrb.mxu3 %v1118_v39 }
 0x152   :  { %v443_v54 = vpop.permute.xlu0 %442 }
 0x153   :  { %v444_v55 = vadd.f32 %v443_v54, %v441_v53 }
 0x155   :  { %445 = vrot.lane.b32.xlu0 %v444_v55, %s1269_s4 }
 0x1c7   :  { %v446_v56 = vpop.permute.xlu0 %445 }
 0x1c8   :  { %v447_v58 = vadd.f32 %v446_v56, %v444_v55 }
 0x1ca   :  { %448 = vrot.lane.b32.xlu1 %v447_v58, %s1270_s18 }
 0x23c   :  { %v449_v60 = vpop.permute.xlu1 %448 }
 0x23d   :  { %v450_v61 = vadd.f32 %v449_v60, %v447_v58 }
 0x23f   :  { %451 = vrot.lane.b32.xlu1 %v450_v61, %s1262_s9 }
 0x2b1   :  { %v452_v12 = vpop.permute.xlu1 %451 }
 0x2b2   :  { %v453_v13 = vadd.f32 %v452_v12, %v450_v61 }
 0x2b4   :  { %v454_v15 = vmul.f32 0.001953125, %v453_v13 }
 0x2b6   :  { %v455_v25 = vmul.f32 %v454_v15, %v454_v15 }
 0x2b8   :  { %v457_v27 = vrot.slane %v455_v25, 7 }
 0x2ba   :  { %v459_v31 = vsub.f32 %v454_v15, %v457_v27 }
 0x2bc   :  { %v460_v36 = vadd.f32 1e-05, %v459_v31 }
 0x2be   :  { %1155 = vrsqrt.f32 %v460_v36  ;;  %vm467_vm8 = vweird.f32 %v460_v36 }
 0x2c4   :  { %v1156_v40 = vpop.eup %1155 }
 0x2c5   :  { %v462_v41 = vmul.f32 %v1156_v40, %v460_v36  ;;  %vm468_vm7 = vweird.f32 %v1156_v40 }
 0x2c6   :  { %vm469_vm9 = vmor %vm467_vm8, %vm468_vm7 }
 0x2c7   :  { %v463_v42 = vmul.f32 %v1156_v40, %v462_v41 }
 0x2c9   :  { %v464_v43 = vmul.f32 0.5, %v463_v42 }
 0x2cb   :  { %v465_v44 = vsub.f32 1.5, %v464_v43 }
 0x2cd   :  { %v466_v46 = vmul.f32 %v1156_v40, %v465_v44 }
 0x2cf   :  { %v470_v47 = vsel %vm469_vm9, %v1156_v40, %v466_v46 }
 0x2d0   :  { %v474_v48 = vmul.f32 %v1153_v45, %v470_v47 }
 0x2d2   :  { %v476_v49 = vrot.slane %v474_v48, 1  ;;  %v480_v51 = vperm.slane %v474_v48, 1 }
 0x2d4   :  { %v478_v52 = vmul.f32 %v476_v49, %v454_v15  ;;  %v481_v54 = vmul.f32 %v480_v51, %v1386_v18  ;;  %v482_v56 = vmul.f32 %v480_v51, %v1384_v17  ;;  %v483_v58 = vmul.f32 %v480_v51, %v1388_v22 }
 0x2d5   :  { %v484_v60 = vmul.f32 %v480_v51, %v1399_v35 }
 0x2d6   :  { %v479_v53 = vsub.f32 %v417_v50, %v478_v52 }
 0x2d8   :  { %v486_v55 = vperm.slane %v479_v53, 0 }
 0x2da   :  { %v488_v61 = vadd.f32 %v486_v55, %v481_v54  ;;  %v489_v62 = vadd.f32 %v486_v55, %v482_v56  ;;  %v490_v63 = vadd.f32 %v486_v55, %v483_v58  ;;  %v491_v0 = vadd.f32 %v486_v55, %v484_v60 }
 0x2dc   :  { %v492_v1 = vmax.f32 %v488_v61, 0.0  ;;  %v493_v2 = vmax.f32 %v489_v62, 0.0  ;;  %v494_v3 = vmax.f32 %v490_v63, 0.0  ;;  %v495_v4 = vmax.f32 %v491_v0, 0.0 }
 0x2de   :  { %v521_v5 = vpack.c.bf16 %v493_v2, %v492_v1  ;;  %v524_v6 = vpack.c.bf16 %v495_v4, %v494_v3  ;;  %v496_v18 = vrot.slane %v492_v1, 7  ;;  %v497_v7 = vrot.slane %v493_v2, 7 }
 0x2df   :  { %v499_v8 = vrot.slane %v495_v4, 7  ;;  %v508_v9 = vrot.slane %v492_v1, 1  ;;  %v509_v17 = vrot.slane %v493_v2, 1  ;;  %v510_v11 = vrot.slane %v494_v3, 1 }
 0x2e0   :  { %745 = vmatmul.bf16.vlgmr.msrb.gmra.mxu0 %v521_v5  ;;  %750 = vmatmul.bf16.vlgmr.msrb.gmra.mxu2 %v524_v6  ;;  %v502_v14 = vsel %vm139_vm1, %v496_v18, %v497_v7  ;;  %v498_v25 = vrot.slane %v494_v3, 7  ;;  %v511_v28 = vrot.slane %v495_v4, 1 }
 0x2e1   :  { %v503_v22 = vsel %vm139_vm1, %v499_v8, %v496_v18  ;;  %v513_v35 = vsel %vm152_vm3, %v509_v17, %v510_v11  ;;  %v514_v15 = vsel %vm152_vm3, %v508_v9, %v509_v17 }
 0x2e2   :  { %v504_v12 = vmul.f32 %v1346_v34, %v503_v22  ;;  %v517_v13 = vmul.f32 %v1351_v38, %v513_v35  ;;  %v501_v26 = vsel %vm139_vm1, %v497_v7, %v498_v25  ;;  %v500_v34 = vsel %vm139_vm1, %v498_v25, %v499_v8 }
 0x2e3   :  { %v506_v27 = vmul.f32 %v1368_v57, %v501_v26  ;;  %v515_v29 = vsel %vm152_vm3, %v511_v28, %v508_v9  ;;  %v512_v31 = vsel %vm152_vm3, %v510_v11, %v511_v28 }
 0x2e4   :  { %v520_v16 = vpack.c.bf16 %v502_v14, %v504_v12  ;;  %v522_v24 = vpack.c.bf16 %v517_v13, %v514_v15  ;;  %v519_v30 = vmul.f32 %v1372_v59, %v515_v29 }
 0x2e5   :  { %v523_v38 = vpack.c.bf16 %v500_v34, %v506_v27 }
 0x2e6   :  { %726 = vmatmul.bf16.vlgmr.msra.gmra.mxu3 %v520_v16  ;;  %764 = vmatmul.bf16.vlgmr.msrb.gmra.mxu1 %v522_v24  ;;  %v525_v32 = vpack.c.bf16 %v519_v30, %v512_v31 }
 0x2f6   :  { %731 = vmatmul.bf16.gmra.mxu3 %v523_v38 }
 0x306   :  { %769 = vmatmul.bf16.vlgmr.msrb.gmra.mxu3 %v525_v32 }
 0x35d   :  { %v746_v57 = vpop.f32.mrf.mxu0 }
 0x363   :  { %v765_v39 = vpop.f32.mrf.mxu1  ;;  %v751_v41 = vpop.f32.mrf.mxu2 }
 0x365   :  { %v748_v42 = vpop.f32.mrf.mxu0 }
 0x369   :  { %v727_v33 = vpop.f32.mrf.mxu3 }
 0x36a   :  { %v747_v44 = vadd.f32 %v746_v57, %v727_v33 }
 0x36b   :  { %v767_v45 = vpop.f32.mrf.mxu1  ;;  %v753_v50 = vpop.f32.mrf.mxu2 }
 0x36c   :  { %v1441_v48 = vadd.f32 %v765_v39, %v747_v44 }
 0x36e   :  { %v786_v51 = vmul.f32 %v1441_v48, %v1441_v48 }
 0x371   :  { %v729_v36 = vpop.f32.mrf.mxu3 }
 0x372   :  { %v749_v43 = vadd.f32 %v748_v42, %v729_v36  ;;  %v1154_v36 = vld [vmem:[%s1483_s5] ss:$0 sm:$0xff]  ;;  %s1271_s5 = smov [#allocation8]  }
 0x374   :  { %v1439_v47 = vadd.f32 %v767_v45, %v749_v43 }
 0x376   :  { %v787_v49 = vmul.f32 %v1439_v47, %v1439_v47  ;;  %v777_v53 = vadd.f32 %v1439_v47, %v1441_v48 }
 0x378   :  { %v790_v58 = vadd.f32 %v787_v49, %v786_v51 }
 0x379   :  { %v732_v37 = vpop.f32.mrf.mxu3 }
 0x37a   :  { %v752_v59 = vadd.f32 %v751_v41, %v732_v37  ;;  %v776_v41 = vld [vmem:[%s1484_s6] sm:$0x1]  ;;  %s866_s6 = sshll.u32 %s1271_s5, 4  ;;  %s867_s6 = int_to_ptr.vmem [resolvable:$true] %s866_s6 }
 0x381   :  { %v734_v40 = vpop.f32.mrf.mxu3 }
 0x382   :  { %v754_v52 = vadd.f32 %v753_v50, %v734_v40 }
 0x389   :  { %v770_v46 = vpop.f32.mrf.mxu3 }
 0x38a   :  { %v1443_v10 = vadd.f32 %v770_v46, %v752_v59 }
 0x38c   :  { %v788_v54 = vmul.f32 %v1443_v10, %v1443_v10  ;;  %v778_v56 = vadd.f32 %v777_v53, %v1443_v10 }
 0x38e   :  { %v791_v61 = vadd.f32 %v790_v58, %v788_v54 }
 0x391   :  { %v772_v55 = vpop.f32.mrf.mxu3 }
 0x392   :  { %v773_v60 = vadd.f32 %v772_v55, %v754_v52 }
 0x394   :  { %v779_v62 = vadd.f32 %v778_v56, %v773_v60  ;;  %v789_v63 = vmul.f32 %v773_v60, %v773_v60 }
 0x396   :  { %v780_v0 = vrot.slane %v779_v62, 4  ;;  %v792_v1 = vadd.f32 %v791_v61, %v789_v63 }
 0x398   :  { %v781_v2 = vadd.f32 %v780_v0, %v779_v62  ;;  %v793_v3 = vrot.slane %v792_v1, 4 }
 0x39a   :  { %v782_v4 = vrot.slane %v781_v2, 2  ;;  %v794_v5 = vadd.f32 %v793_v3, %v792_v1 }
 0x39c   :  { %v783_v6 = vadd.f32 %v782_v4, %v781_v2  ;;  %v795_v18 = vrot.slane %v794_v5, 2 }
 0x39e   :  { %v784_v7 = vrot.slane %v783_v6, 1  ;;  %v796_v8 = vadd.f32 %v795_v18, %v794_v5 }
 0x3a0   :  { %v797_v9 = vrot.slane %v796_v8, 1  ;;  %v785_v17 = vadd.f32 %v784_v7, %v783_v6 }
 0x3a2   :  { %v798_v11 = vadd.f32 %v797_v9, %v796_v8 }
 0x3a4   :  { %v799_v22 = vsel %vm440_vm6, %v785_v17, %v798_v11 }
 0x3a5   :  { %800 = vrot.lane.b32.xlu2 %v799_v22, %s1266_s1 }
 0x3ff   :  { %v801_v35 = vpop.permute.xlu2 %800 }
 0x400   :  { %v802_v12 = vadd.f32 %v801_v35, %v799_v22 }
 0x402   :  { %803 = vrot.lane.b32.xlu2 %v802_v12, %s1269_s4 }
 0x45c   :  { %v804_v13 = vpop.permute.xlu2 %803 }
 0x45d   :  { %v805_v14 = vadd.f32 %v804_v13, %v802_v12 }
 0x45f   :  { %806 = vrot.lane.b32.xlu0 %v805_v14, %s1270_s18 }
 0x4d1   :  { %v807_v15 = vpop.permute.xlu0 %806 }
 0x4d2   :  { %v808_v16 = vadd.f32 %v807_v15, %v805_v14 }
 0x4d4   :  { %809 = vrot.lane.b32.xlu1 %v808_v16, %s1262_s9 }
 0x546   :  { %v810_v24 = vpop.permute.xlu1 %809 }
 0x547   :  { %v811_v25 = vadd.f32 %v810_v24, %v808_v16 }
 0x549   :  { %v812_v26 = vmul.f32 0.001953125, %v811_v25 }
 0x54b   :  { %v813_v27 = vmul.f32 %v812_v26, %v812_v26 }
 0x54d   :  { %v815_v34 = vrot.slane %v813_v27, 7 }
 0x54f   :  { %v817_v38 = vsub.f32 %v812_v26, %v815_v34 }
 0x551   :  { %v818_v28 = vadd.f32 1e-05, %v817_v38 }
 0x553   :  { %1157 = vrsqrt.f32 %v818_v28  ;;  %vm825_vm11 = vweird.f32 %v818_v28 }
 0x559   :  { %v1158_v29 = vpop.eup %1157 }
 0x55a   :  { %v820_v30 = vmul.f32 %v1158_v29, %v818_v28  ;;  %vm826_vm10 = vweird.f32 %v1158_v29 }
 0x55b   :  { %vm827_vm12 = vmor %vm825_vm11, %vm826_vm10 }
 0x55c   :  { %v821_v31 = vmul.f32 %v1158_v29, %v820_v30 }
 0x55e   :  { %v822_v32 = vmul.f32 0.5, %v821_v31 }
 0x560   :  { %v823_v33 = vsub.f32 1.5, %v822_v32 }
 0x562   :  { %v824_v37 = vmul.f32 %v1158_v29, %v823_v33 }
 0x564   :  { %v828_v57 = vsel %vm827_vm12, %v1158_v29, %v824_v37 }
 0x565   :  { %v832_v39 = vmul.f32 %v1154_v36, %v828_v57 }
 0x567   :  { %v834_v40 = vrot.slane %v832_v39, 1  ;;  %v838_v42 = vperm.slane %v832_v39, 1 }
 0x569   :  { %v836_v43 = vmul.f32 %v834_v40, %v812_v26  ;;  %v839_v45 = vmul.f32 %v838_v42, %v1441_v48  ;;  %v840_v46 = vmul.f32 %v838_v42, %v1439_v47  ;;  %v841_v59 = vmul.f32 %v838_v42, %v1443_v10 }
 0x56a   :  { %v842_v49 = vmul.f32 %v838_v42, %v773_v60 }
 0x56b   :  { %v837_v44 = vsub.f32 %v776_v41, %v836_v43 }
 0x56d   :  { %v844_v50 = vperm.slane %v837_v44, 0 }
 0x56f   :  { %v846_v51 = vadd.f32 %v844_v50, %v839_v45  ;;  %v847_v52 = vadd.f32 %v844_v50, %v840_v46  ;;  %v848_v53 = vadd.f32 %v844_v50, %v841_v59  ;;  %v849_v54 = vadd.f32 %v844_v50, %v842_v49 }
 0x571   :  { %v850_v55 = vadd.f32 %v846_v51, %v1332_v19  ;;  %v851_v56 = vadd.f32 %v847_v52, %v1336_v21  ;;  %v852_v58 = vadd.f32 %v848_v53, %v1338_v23  ;;  %v853_v61 = vadd.f32 %v849_v54, %v1334_v20 }
 0x573   :  { %v854_v62 = vmax.f32 %v850_v55, 0.0  ;;  %v855_v48 = vmax.f32 %v851_v56, 0.0  ;;  %v856_v63 = vmax.f32 %v852_v58, 0.0  ;;  %v857_v47 = vmax.f32 %v853_v61, 0.0 }
 0x575   :  { %858 = vst [vmem:[#allocation8] sm:$0xff] %v854_v62 }
 0x576   :  { %859 = vst [vmem:[#allocation8 + $0x8] sm:$0xff] %v855_v48 }
 0x577   :  { %860 = vst [vmem:[#allocation8 + $0x10] sm:$0xff] %v856_v63 }
 0x578   :  { %861 = vst [vmem:[#allocation8 + $0x18] sm:$0xff] %v857_v47 }
 0x579   :  { %874 = dma.vmem_to_hbm [thread:$0]  %s867_s6, 512, %s869_s27, [#allocation4], %s1265_s13, %s1265_s13, %s1266_s1  }
 0x57a   :  { %1259 = dma.done.wait [#allocation4], 512  }
 0x57b   :  { %1260 = vsyncadd [#allocation4], 4294966784 }
 0x57c   :  { %879 = vsyncpa [#allocation3], 1 }
 0x57d   :  { %880 = vsyncpa [#allocation6], 1 }
 0x57e   :  { %881 = vsyncpa [#allocation4], 1 }

</bundles_post_ra>
